<compile_context>
chip_gen: v7x
topology: tpu7x:2x2x1
jax: 0.10.0
libtpu: 0.0.40
codegen_flags: <defaults>
</compile_context>

<pallas_src>
from functools import partial

import jax
import jax.numpy as jnp
from jax.experimental import pallas as pl
from jax.experimental.pallas import tpu as pltpu

# ---------------------------------------------------------------------------
# Structuring-element bookkeeping (mirrors SoftErosion3D.__init__/allcondArithm)
# Used by the pure-JAX reference; the kernel uses equivalent factorized forms.
# ---------------------------------------------------------------------------
_INDICES_LIST = [
    [2, 0, 0], [2, 0, 1], [2, 0, 2], [1, 0, 2], [0, 0, 2], [0, 0, 1],
    [0, 0, 0], [1, 0, 0], [1, 0, 1], [2, 1, 0], [2, 1, 1], [2, 1, 2],
    [1, 1, 2], [0, 1, 2], [0, 1, 1], [0, 1, 0], [1, 1, 0], [2, 2, 0],
    [2, 2, 1], [2, 2, 2], [1, 2, 2], [0, 2, 2], [0, 2, 1], [0, 2, 0],
    [1, 2, 0], [1, 2, 1], [1, 1, 1],
]

_VOX = {
    6:  [8, 10, 12, 25, 16, 14, 26],
    18: [8, 10, 12, 25, 16, 14, 1, 3, 5, 7, 9, 11, 13, 15, 18, 20, 22, 24, 26],
    26: [8, 10, 12, 25, 16, 14, 1, 3, 5, 7, 9, 11, 13, 15, 18, 20, 22, 24,
         0, 2, 4, 6, 17, 19, 21, 23, 26],
}


def _offsets(connectivity):
    """(d, h, w) cube offsets (0..2, center at (1,1,1)) used by the product."""
    return tuple(tuple(_INDICES_LIST[k]) for k in _VOX[connectivity])


# ---------------------------------------------------------------------------
# Kernel building blocks
# ---------------------------------------------------------------------------
def _roll(v, amount, axis):
    n = v.shape[axis]
    amount %= n
    if amount == 0:
        return v
    return pltpu.roll(v, shift=amount, axis=axis)


def _valid_masks(Dk, HWp, D, H, W, d0):
    """Boundary masks implementing the implicit pad-with-1.0 halo.

    Built with leading shape (1, Dk, HWp) and broadcast over the bc tile so
    they do not inflate VMEM / vreg pressure.  `d0` is the GLOBAL depth index
    of local row 0 (0 for the un-tiled path, traced for the D-tiled path).
    """
    shape = (1, Dk, HWp)
    d_idx = jax.lax.broadcasted_iota(jnp.int32, shape, 1) + d0
    f_idx = jax.lax.broadcasted_iota(jnp.int32, shape, 2)
    if W & (W - 1) == 0:                       # avoid lax.rem when possible
        w_idx = jax.lax.bitwise_and(f_idx, W - 1)
    else:
        w_idx = jax.lax.rem(f_idx, W)
    return {
        ("d", +1): d_idx < (D - 1),
        ("d", -1): d_idx >= 1,
        ("h", +1): f_idx < (H - 1) * W,
        ("h", -1): f_idx >= W,
        ("w", +1): w_idx < (W - 1),
        ("w", -1): w_idx >= 1,
    }


def _make_shift(valid, W):
    """Shifted-neighborhood read; voxels outside the volume read as 1.0."""
    # TODO(synk): if bundle dumps show the 2 XLU slots binding (v6e, conn=18),
    # move the d-axis shifts onto the idle vld slots via sublane-offset
    # re-loads from a VMEM scratch instead of pltpu.roll.
    def shift(v, axis_name, delta):
        if axis_name == "d":
            r = _roll(v, -delta, 1)            # sublane rotation
        elif axis_name == "h":
            r = _roll(v, -delta * W, 2)        # lane rotation by W
        else:                                  # "w"
            r = _roll(v, -delta, 2)            # lane rotation by 1
        return jnp.where(valid[(axis_name, delta)], r, 1.0)
    return shift


def _erode_once(y, shift, connectivity):
    if connectivity == 6:
        neigh = (shift(y, "w", 1) * shift(y, "w", -1)
                 * shift(y, "h", 1) * shift(y, "h", -1)
                 * shift(y, "d", 1) * shift(y, "d", -1))
        prod_vox = y * neigh                                # center + 6 faces
    elif connectivity == 18:
        cw = shift(y, "w", 1) * shift(y, "w", -1)           # ( 0, 0,+-1)
        ch = shift(y, "h", 1) * shift(y, "h", -1)           # ( 0,+-1, 0)
        cd = shift(y, "d", 1) * shift(y, "d", -1)           # (+-1, 0, 0)
        e_d0 = shift(cw, "h", 1) * shift(cw, "h", -1)       # ( 0,+-1,+-1)
        e_h0 = shift(cw, "d", 1) * shift(cw, "d", -1)       # (+-1, 0,+-1)
        e_w0 = shift(ch, "d", 1) * shift(ch, "d", -1)       # (+-1,+-1, 0)
        prod_vox = y * cw * ch * cd * e_d0 * e_h0 * e_w0    # 19 voxels
    else:  # 26: full 3x3x3 cube -> separable product (6 shifts, not 26)
        pw = y * shift(y, "w", 1) * shift(y, "w", -1)
        ph = pw * shift(pw, "h", 1) * shift(pw, "h", -1)
        prod_vox = ph * shift(ph, "d", 1) * shift(ph, "d", -1)
    # NOTE: prod_vox already contains one factor of the center voxel (the
    # structuring element includes index 26), so y * prod_vox is
    # center^2 * neighbors -- identical to the PyTorch module.
    return y * prod_vox


def _iterate(y, shift, connectivity, iterations):
    if iterations <= 3:   # short: full unroll for LLO scheduler visibility
        for _ in range(iterations):
            y = _erode_once(y, shift, connectivity)
        return y
    # Long: fori_loop bounds code size and the live-temporary working set.
    return jax.lax.fori_loop(
        0, iterations, lambda _, v: _erode_once(v, shift, connectivity), y)


# ---------------------------------------------------------------------------
# Kernels
# ---------------------------------------------------------------------------
def _erosion_kernel(x_ref, o_ref, *, D, H, W, connectivity, iterations):
    """Block = [bc_tile, D, HWp]; the full depth slab is resident in VMEM."""
    Dk, HWp = x_ref.shape[1], x_ref.shape[2]
    y = x_ref[...].astype(jnp.float32)      # compute in f32 even for bf16 I/O
    shift = _make_shift(_valid_masks(Dk, HWp, D, H, W, 0), W)
    y = _iterate(y, shift, connectivity, iterations)
    o_ref[...] = y.astype(o_ref.dtype)


def _erosion_kernel_dtiled(xp_ref, xc_ref, xn_ref, o_ref, *, D, H, W, td,
                           connectivity, iterations):
    """D-tiled overlap-recompute: the kernel sees the previous / current /
    next D-blocks (halo of td >= iterations voxels per side) and writes only
    the middle block.  Boundary masks use GLOBAL depth indices so rows that
    lie outside the volume behave exactly like the constant-1.0 pad."""
    HWp = xc_ref.shape[2]
    d0 = pl.program_id(1) * td - td          # global depth of local row 0
    y = jnp.concatenate([xp_ref[...], xc_ref[...], xn_ref[...]],
                        axis=1).astype(jnp.float32)
    shift = _make_shift(_valid_masks(3 * td, HWp, D, H, W, d0), W)
    y = _iterate(y, shift, connectivity, iterations)
    o_ref[...] = y[:, td:2 * td, :].astype(o_ref.dtype)


# ---------------------------------------------------------------------------
# Generation-aware tiling plan
# ---------------------------------------------------------------------------
_LIVE_TEMPS = {6: 5, 18: 9, 26: 5}   # rough full-slab f32 temporaries live at once


def _round_up(x, m):
    return ((x + m - 1) // m) * m


def _vmem_capacity_bytes():
    try:
        cap = int(getattr(pltpu.get_tpu_info(), "vmem_capacity_bytes", 0))
        if cap > 0:
            return cap
    except Exception:
        pass
    return 64 * 1024 * 1024   # conservative default: v7x has 64 MiB / TensorCore


def _plan_tiling(BC, D, HWp, io_itemsize, connectivity, iterations):
    """Returns (mode, bc_tile, td, vmem_limit_bytes)."""
    cap = _vmem_capacity_bytes()
    budget = int(cap * 0.55)          # headroom for Mosaic internals / spills
    vmem_limit = int(cap * 0.90)
    k_live = _LIVE_TEMPS[connectivity]

    # ---- simple path: block = (bc_tile, D, HWp) ---------------------------
    # 2x(in + out) pipeline buffers in the I/O dtype + k_live f32 temporaries.
    per_elem = 4 * io_itemsize + 4 * k_live
    bc_tile_cap = budget // (per_elem * D * HWp)

    needs_split = bc_tile_cap < 1                 # one full-D slab won't fit
    wants_split = BC < 4 and D >= 16              # feed both v7x TensorCores
    if not needs_split and not wants_split:
        bc_tile = int(min(bc_tile_cap, max(1, pl.cdiv(BC, 4)), BC))
        return "simple", bc_tile, None, vmem_limit

    # ---- D-tiled path: blocks = (bc_tile, td, HWp), kernel slab = 3*td ----
    bc_tile = max(1, int(min(BC, bc_tile_cap)))
    per_elem_dt = 8 * io_itemsize + 12 * k_live   # 2x(3 in + 1 out) bufs + 3*td temps
    td_cap = budget // (per_elem_dt * bc_tile * HWp)
    td_cap = max(8, (td_cap // 8) * 8)
    need_d = max(1, pl.cdiv(4, pl.cdiv(BC, bc_tile)))   # >= 4 grid steps total
    td = max(8, min(td_cap, _round_up(pl.cdiv(D, need_d), 8)))
    td = max(td, _round_up(max(1, iterations), 8))      # halo must cover iterations
    if td >= D:
        # TODO(synk): tile H*W as well when even a td=8 slab exceeds VMEM.
        return "simple", bc_tile, None, vmem_limit
    return "dtiled", bc_tile, int(td), vmem_limit


# ---------------------------------------------------------------------------
# Public wrapper
# ---------------------------------------------------------------------------
def soft_erosion_3d(im, iterations=1, connectivity=6, method="product",
                    io_dtype=None):
    """Soft 3D erosion ("product" t-norm).

    im: [B, C, D, H, W], [C, D, H, W] or [D, H, W] array with values in [0, 1].
    io_dtype: optional narrower HBM-boundary dtype (e.g. jnp.bfloat16) for the
      memory-bound v5e/v6e regime; products are always computed in float32.
    """
    if method not in ("product", "multi-linear"):
        # TODO(synk): minmax/drastic/bounded/einstein/hamacher t-norm variants.
        raise NotImplementedError("only the 'product' method is implemented")
    if connectivity not in (6, 18, 26):
        raise ValueError("Connectivity should either be 6, 18 or 26")
    iterations = int(iterations)

    if im.ndim == 3:
        im5 = im[None, None]
    elif im.ndim == 4:
        im5 = im[None]
    elif im.ndim == 5:
        im5 = im
    else:
        raise ValueError("expected [B, C, D, H, W], [C, D, H, W] or [D, H, W]")

    B, C, D, H, W = im5.shape
    BC, HW = B * C, H * W
    HWp = _round_up(max(HW, 128), 128)          # lane-dense last dim
    orig_dtype = im5.dtype

    x = im5.reshape(BC, D, HW)                  # free row-major merge
    if io_dtype is not None:
        x = x.astype(io_dtype)
    if HWp != HW:
        # 1.0 is the multiplicative identity -> padding lanes are inert.
        x = jnp.pad(x, ((0, 0), (0, 0), (0, HWp - HW)), constant_values=1.0)

    io_itemsize = jnp.dtype(x.dtype).itemsize
    mode, bc_tile, td, vmem_limit = _plan_tiling(
        BC, D, HWp, io_itemsize, connectivity, iterations)
    cparams = pltpu.CompilerParams(
        dimension_semantics=(("parallel",) if mode == "simple"
                             else ("parallel", "parallel")),
        vmem_limit_bytes=vmem_limit)
    out_shape = jax.ShapeDtypeStruct((BC, D, HWp), x.dtype)

    # TODO(synk): donate x via input_output_aliases={0: 0} in the simple path
    # to halve peak HBM footprint for very large volumes.
    if mode == "simple":
        kernel = partial(_erosion_kernel, D=D, H=H, W=W,
                         connectivity=connectivity, iterations=iterations)
        spec = pl.BlockSpec((bc_tile, D, HWp), lambda i: (i, 0, 0))
        out = pl.pallas_call(
            kernel, out_shape=out_shape, grid=(pl.cdiv(BC, bc_tile),),
            in_specs=[spec], out_specs=spec, compiler_params=cparams,
        )(x)
    else:
        nd = pl.cdiv(D, td)
        kernel = partial(_erosion_kernel_dtiled, D=D, H=H, W=W, td=td,
                         connectivity=connectivity, iterations=iterations)
        blk = (bc_tile, td, HWp)
        # TODO(synk): a BoundedSlice-based halo read (or in-kernel halo
        # exchange) would avoid reading each D-block three times.
        prev = pl.BlockSpec(blk, lambda b, d: (b, jnp.maximum(d - 1, 0), 0))
        cur = pl.BlockSpec(blk, lambda b, d: (b, d, 0))
        nxt = pl.BlockSpec(blk, lambda b, d: (b, jnp.minimum(d + 1, nd - 1), 0))
        out = pl.pallas_call(
            kernel, out_shape=out_shape, grid=(pl.cdiv(BC, bc_tile), nd),
            in_specs=[prev, cur, nxt], out_specs=cur, compiler_params=cparams,
        )(x, x, x)

    if HWp != HW:
        out = out[..., :HW]
    if io_dtype is not None:
        out = out.astype(orig_dtype)
    return out.reshape(im.shape)


# ---------------------------------------------------------------------------
# Pure-JAX reference (direct transcription of the torch math) for verification
# ---------------------------------------------------------------------------
def _ref_soft_erosion_3d(im, iterations=1, connectivity=6):
    offsets = _offsets(connectivity)
    B, C, D, H, W = im.shape
    x = im
    for _ in range(iterations):
        pad = jnp.pad(x, ((0, 0), (0, 0), (1, 1), (1, 1), (1, 1)),
                      constant_values=1.0)
        acc = x
        for (od, oh, ow) in offsets:
            acc = acc * pad[:, :, od:od + D, oh:oh + H, ow:ow + W]
        x = acc
    return x


if __name__ == "__main__":
    key = jax.random.PRNGKey(0)

    # 1) "simple" (batch*channel-tiled) path, several connectivities / iters.
    x1 = jax.random.uniform(key, (2, 4, 16, 16, 16), dtype=jnp.float32)
    for conn, iters in ((6, 1), (6, 2), (18, 1), (26, 1), (26, 5)):
        out = jax.block_until_ready(
            soft_erosion_3d(x1, iterations=iters, connectivity=conn))
        ref = _ref_soft_erosion_3d(x1, iterations=iters, connectivity=conn)
        assert out.shape == x1.shape
        assert jnp.allclose(out, ref, atol=1e-6, rtol=1e-5), (conn, iters)

    # 2) D-tiled path (single volume -> depth split with iterations-deep halo).
    x2 = jax.random.uniform(jax.random.fold_in(key, 1), (32, 16, 16),
                            dtype=jnp.float32)
    for conn, iters in ((6, 1), (18, 2), (26, 2)):
        out = jax.block_until_ready(
            soft_erosion_3d(x2, iterations=iters, connectivity=conn))
        ref = _ref_soft_erosion_3d(x2[None, None], iterations=iters,
                                   connectivity=conn)[0, 0]
        assert out.shape == x2.shape
        assert jnp.allclose(out, ref, atol=1e-6, rtol=1e-5), (conn, iters)

    # 3) non-multiple-of-128 lane width (H*W=144 -> padded to 256), W not pow2.
    x3 = jax.random.uniform(jax.random.fold_in(key, 2), (2, 2, 8, 12, 12),
                            dtype=jnp.float32)
    for conn in (6, 26):
        out = jax.block_until_ready(soft_erosion_3d(x3, 1, conn))
        ref = _ref_soft_erosion_3d(x3, 1, conn)
        assert jnp.allclose(out, ref, atol=1e-6, rtol=1e-5), conn

    # 4) partial last block on the bc axis (BC=7, bc_tile=2, 4 grid steps).
    x4 = jax.random.uniform(jax.random.fold_in(key, 3), (1, 7, 8, 8, 16),
                            dtype=jnp.float32)
    out = jax.block_until_ready(soft_erosion_3d(x4, 1, 18))
    ref = _ref_soft_erosion_3d(x4, 1, 18)
    assert jnp.allclose(out, ref, atol=1e-6, rtol=1e-5)

    # 5) bf16 HBM-boundary mode (compute stays f32 inside the kernel).
    out = jax.block_until_ready(
        soft_erosion_3d(x1, 1, 6, io_dtype=jnp.bfloat16))
    ref = _ref_soft_erosion_3d(
        x1.astype(jnp.bfloat16).astype(jnp.float32), 1, 6)
    assert jnp.allclose(out, ref, atol=1e-2, rtol=1e-2)

    print("KERNEL_OK")
</pallas_src>

<mosaic_0001>
module attributes {stable_mosaic.version = 11 : i64} {
  func.func @_erosion_kernel(%arg0: i32, %arg1: memref<2x16x256xf32, #tpu.memory_space<vmem>>, %arg2: memref<2x16x256xf32, #tpu.memory_space<vmem>>) attributes {dimension_semantics = [#tpu.dimension_semantics<parallel>], iteration_bounds = array<i64: 4>, scalar_prefetch = 0 : i64, scratch_operands = 0 : i64, tpu.core_type = #tpu.core_type<tc>, window_params = [{transform_indices = @transform_0, window_bounds = array<i64: 2, 16, 256>}, {transform_indices = @transform_1, window_bounds = array<i64: 2, 16, 256>}]} {
    %c0 = arith.constant 0 : index
    %c0_0 = arith.constant 0 : index
    %c0_1 = arith.constant 0 : index
    %0 = vector.load %arg1[%c0, %c0_0, %c0_1] : memref<2x16x256xf32, #tpu.memory_space<vmem>>, vector<2x16x256xf32>
    %1 = tpu.iota {dimensions = array<i32: 1>} : vector<1x16x256xi32>
    %c0_i32 = arith.constant 0 : i32
    %2 = vector.broadcast %c0_i32 : i32 to vector<1x16x256xi32>
    %3 = arith.addi %1, %2 : vector<1x16x256xi32>
    %4 = tpu.iota {dimensions = array<i32: 2>} : vector<1x16x256xi32>
    %c15_i32 = arith.constant 15 : i32
    %5 = vector.broadcast %c15_i32 : i32 to vector<1x16x256xi32>
    %6 = arith.andi %4, %5 : vector<1x16x256xi32>
    %c15_i32_2 = arith.constant 15 : i32
    %7 = vector.broadcast %c15_i32_2 : i32 to vector<1x16x256xi32>
    %8 = arith.cmpi slt, %3, %7 : vector<1x16x256xi32>
    %c1_i32 = arith.constant 1 : i32
    %9 = vector.broadcast %c1_i32 : i32 to vector<1x16x256xi32>
    %10 = arith.cmpi sge, %3, %9 : vector<1x16x256xi32>
    %c240_i32 = arith.constant 240 : i32
    %11 = vector.broadcast %c240_i32 : i32 to vector<1x16x256xi32>
    %12 = arith.cmpi slt, %4, %11 : vector<1x16x256xi32>
    %c16_i32 = arith.constant 16 : i32
    %13 = vector.broadcast %c16_i32 : i32 to vector<1x16x256xi32>
    %14 = arith.cmpi sge, %4, %13 : vector<1x16x256xi32>
    %c15_i32_3 = arith.constant 15 : i32
    %15 = vector.broadcast %c15_i32_3 : i32 to vector<1x16x256xi32>
    %16 = arith.cmpi slt, %6, %15 : vector<1x16x256xi32>
    %c1_i32_4 = arith.constant 1 : i32
    %17 = vector.broadcast %c1_i32_4 : i32 to vector<1x16x256xi32>
    %18 = arith.cmpi sge, %6, %17 : vector<1x16x256xi32>
    %c255_i32 = arith.constant 255 : i32
    %19 = tpu.dynamic_rotate %0 by %c255_i32 dim 2 : vector<2x16x256xf32>, i32 -> vector<2x16x256xf32>
    %cst = arith.constant 1.000000e+00 : f32
    %20 = vector.shape_cast %16 : vector<1x16x256xi1> to vector<1x16x256xi1>
    %21 = vector.broadcast %20 : vector<1x16x256xi1> to vector<2x16x256xi1>
    %22 = vector.broadcast %cst : f32 to vector<2x16x256xf32>
    %23 = arith.select %21, %19, %22 : vector<2x16x256xi1>, vector<2x16x256xf32>
    %c1_i32_5 = arith.constant 1 : i32
    %24 = tpu.dynamic_rotate %0 by %c1_i32_5 dim 2 : vector<2x16x256xf32>, i32 -> vector<2x16x256xf32>
    %cst_6 = arith.constant 1.000000e+00 : f32
    %25 = vector.shape_cast %18 : vector<1x16x256xi1> to vector<1x16x256xi1>
    %26 = vector.broadcast %25 : vector<1x16x256xi1> to vector<2x16x256xi1>
    %27 = vector.broadcast %cst_6 : f32 to vector<2x16x256xf32>
    %28 = arith.select %26, %24, %27 : vector<2x16x256xi1>, vector<2x16x256xf32>
    %29 = arith.mulf %23, %28 : vector<2x16x256xf32>
    %c240_i32_7 = arith.constant 240 : i32
    %30 = tpu.dynamic_rotate %0 by %c240_i32_7 dim 2 : vector<2x16x256xf32>, i32 -> vector<2x16x256xf32>
    %cst_8 = arith.constant 1.000000e+00 : f32
    %31 = vector.shape_cast %12 : vector<1x16x256xi1> to vector<1x16x256xi1>
    %32 = vector.broadcast %31 : vector<1x16x256xi1> to vector<2x16x256xi1>
    %33 = vector.broadcast %cst_8 : f32 to vector<2x16x256xf32>
    %34 = arith.select %32, %30, %33 : vector<2x16x256xi1>, vector<2x16x256xf32>
    %35 = arith.mulf %29, %34 : vector<2x16x256xf32>
    %c16_i32_9 = arith.constant 16 : i32
    %36 = tpu.dynamic_rotate %0 by %c16_i32_9 dim 2 : vector<2x16x256xf32>, i32 -> vector<2x16x256xf32>
    %cst_10 = arith.constant 1.000000e+00 : f32
    %37 = vector.shape_cast %14 : vector<1x16x256xi1> to vector<1x16x256xi1>
    %38 = vector.broadcast %37 : vector<1x16x256xi1> to vector<2x16x256xi1>
    %39 = vector.broadcast %cst_10 : f32 to vector<2x16x256xf32>
    %40 = arith.select %38, %36, %39 : vector<2x16x256xi1>, vector<2x16x256xf32>
    %41 = arith.mulf %35, %40 : vector<2x16x256xf32>
    %c15_i32_11 = arith.constant 15 : i32
    %42 = tpu.dynamic_rotate %0 by %c15_i32_11 dim 1 : vector<2x16x256xf32>, i32 -> vector<2x16x256xf32>
    %cst_12 = arith.constant 1.000000e+00 : f32
    %43 = vector.shape_cast %8 : vector<1x16x256xi1> to vector<1x16x256xi1>
    %44 = vector.broadcast %43 : vector<1x16x256xi1> to vector<2x16x256xi1>
    %45 = vector.broadcast %cst_12 : f32 to vector<2x16x256xf32>
    %46 = arith.select %44, %42, %45 : vector<2x16x256xi1>, vector<2x16x256xf32>
    %47 = arith.mulf %41, %46 : vector<2x16x256xf32>
    %c1_i32_13 = arith.constant 1 : i32
    %48 = tpu.dynamic_rotate %0 by %c1_i32_13 dim 1 : vector<2x16x256xf32>, i32 -> vector<2x16x256xf32>
    %cst_14 = arith.constant 1.000000e+00 : f32
    %49 = vector.shape_cast %10 : vector<1x16x256xi1> to vector<1x16x256xi1>
    %50 = vector.broadcast %49 : vector<1x16x256xi1> to vector<2x16x256xi1>
    %51 = vector.broadcast %cst_14 : f32 to vector<2x16x256xf32>
    %52 = arith.select %50, %48, %51 : vector<2x16x256xi1>, vector<2x16x256xf32>
    %53 = arith.mulf %47, %52 : vector<2x16x256xf32>
    %54 = arith.mulf %0, %53 : vector<2x16x256xf32>
    %55 = arith.mulf %0, %54 : vector<2x16x256xf32>
    %c0_15 = arith.constant 0 : index
    %c0_16 = arith.constant 0 : index
    %c0_17 = arith.constant 0 : index
    %56 = vector.load %arg2[%c0_15, %c0_16, %c0_17] : memref<2x16x256xf32, #tpu.memory_space<vmem>>, vector<2x16x256xf32>
    tpu.vector_store %arg2[%c0_15, %c0_16, %c0_17], %55 {strides = array<i32>} : memref<2x16x256xf32, #tpu.memory_space<vmem>>, vector<2x16x256xf32>,
    return
  }
  func.func @transform_0(%arg0: i32) -> (i32, i32, i32) {
    %c0_i32 = arith.constant 0 : i32
    %c0_i32_0 = arith.constant 0 : i32
    %c0_i32_1 = arith.constant 0 : i32
    return %arg0, %c0_i32, %c0_i32_0 : i32, i32, i32
  }
  func.func @transform_1(%arg0: i32) -> (i32, i32, i32) {
    %c0_i32 = arith.constant 0 : i32
    %c0_i32_0 = arith.constant 0 : i32
    %c0_i32_1 = arith.constant 0 : i32
    return %arg0, %c0_i32, %c0_i32_0 : i32, i32, i32
  }
}

</mosaic_0001>

<bundles_post_ra>
// kernel: tpu_custom_call.1
= control target key start
LH: loop header
LB: loop body
LE: loop exit
PB: predicated region body
PF: predicated region fallthrough
CT: control target
= control target key end

     0   :  { %6 = vsyncpa [#allocation3], 0  ;;  %s1286_s0 = inlined_call_operand.hbm [shape: f32[8,16,256], index: 0, kind: input, shape index: {}]   ;;  %s1287_s1 = inlined_call_operand.hbm [shape: f32[8,16,256], index: 1, kind: output, shape index: {}]  }
   0x1   :  { %8 = vsyncpa [#allocation3 + $0x1], 0 }
   0x2   :  { %9 = vsyncpa [#allocation4], 0 }
   0x3   :  { %11 = vsyncpa [#allocation4 + $0x1], 0  ;;  %s714_s6 = smov 0   ;;  %s716_s7 = smov 0  }
   0x4   :  { %s718_s8 = smov 0   ;;  %s720_s9 = smov 0  }
   0x5 LB: > { %s735_s10 = sadd.s32 4294967295, %s693_s9   ;;  %s524_s11 = sadd.s32 4294967294, %s693_s9   ;;  %s693_s9 = sphi %s720_s9, %s1311_s9   ;;  %s689_s8 = sphi %s718_s8, %s1310_s8   ;;  %s685_s7 = sphi %s716_s7, %s1309_s7   ;;  %s681_s6 = sphi %s714_s6, %s1308_s6  }
   0x6   : > { %s739_s12 = sadd.s32 1, %s693_s9   ;;  %s24_s13 = sadd.s32 1, %s689_s8 }
   0x7   : > { %s21_s14 = ssub.s32 %s693_s9, %s739_s12  ;;  %p31_p0 = scmp.ne.s32.totalorder %s689_s8, %s685_s7 }
   0x8   : > { %p22_p1 = scmp.eq.s32.totalorder %s21_s14, 0  ;;  %p32_p2 = scmp.eq.s32.totalorder %s693_s9, 0 }
   0x9   : > { %p37_p3 = scmp.ne.s32.totalorder %s685_s7, %s681_s6  ;;  %p38_p4 = scmp.eq.s32.totalorder %s735_s10, 0 }
   0xa   : > { %s751_s15 = scalar_select %p22_p1, %s689_s8, %s24_s13  }
   0xb   : > { %p753_p5 = por %p32_p2, %p31_p0  ;;  %p757_p6 = por %p38_p4, %p37_p3 }
   0xc   : > { %p61_p7 = scmp.eq.s32.totalorder %s735_s10, 3  ;;  %p67_p8 = scmp.eq.s32.totalorder %s524_s11, 3 }
   0xd   : > { %p556_p9 = scmp.lt.s32.totalorder %s693_s9, 4  ;;  %s87_s20 = sand.u32 1, %s689_s8  }
   0xe   : > { %p763_p10 = por %p61_p7, %p31_p0  ;;  %p767_p11 = por %p67_p8, %p37_p3 }
   0xf   : > { %s541_s21 = sshll.u32 %s693_s9, 10  ;;  %s527_s22 = sshll.u32 %s87_s20, 6 }
  0x10   : > { %s1293_s18 = scalar_select %p763_p10, 1, 0 }
  0x11   : > { %s1294_s19 = scalar_select %p767_p11, 1, 0 }
  0x12   : > { %s776_s25 = scalar_lea.hbm %s1286_s0, %s541_s21  ;;  %s91_s26 = scalar_lea.vmem [#allocation2], %s527_s22 }
  0x13   : > { %s99_s27 = sshll.u32 %s91_s26, 4  ;;  %p780_p12 = pnand %p556_p9, %p753_p5  ;;  %s784_s27 = int_to_ptr.vmem [resolvable:$true] %s99_s27 }
  0x14   : > { %s786_s29 = scalar_lea.sflag [#allocation3], %s87_s20  ;;  %s597_s30 = scalar_lea.hbm %s776_s25, 1024 }
  0x15   : > { %p598_p13 = scmp.ne.s32.totalorder %s776_s25, %s597_s30  ;;  %p599_p0 = pneg %p780_p12 }
  0x16   : > { %s602_s4 = scalar_lea.hbm %s1286_s0, 4096  ;;  %p603_p3 = scmp.lt.u32.totalorder %s776_s25, %s1286_s0 }
  0x17   : > { %p600_p1 = pnand %p599_p0, %p598_p13  ;;  %p604_p4 = scmp.lt.u32.totalorder %s602_s4, %s597_s30 }
  0x18   : > { %p606_p7 = scmp.lt.u32.totalorder %s597_s30, %s776_s25 }
  0x19   : > { %p601_p2 = pneg %p600_p1  ;;  %p605_p5 = por %p604_p4, %p603_p3 }
  0x1b   : > { %p607_p8 = por %p606_p7, %p605_p5 }
  0x1d   : > { %p608_p9 = pnand %p607_p8, %p601_p2 }
  0x1f   : > { %611 = shalt.err (!%p608_p9)
}
  0x20   : > { %s612_s13 = scalar_lea.vmem %s784_s27, 1024  ;;  %s695_s14 = smov [#allocation2]  }
  0x21   : > { %p613_p13 = scmp.ne.s32.totalorder %s784_s27, %s612_s13  ;;  %s617_s16 = sshll.u32 %s695_s14, 4  ;;  %s618_s16 = int_to_ptr.vmem [resolvable:$false] %s617_s16 }
  0x22   : > { %s619_s20 = scalar_lea.vmem %s618_s16, 2048  ;;  %p620_p10 = scmp.lt.s32.totalorder %s784_s27, %s618_s16 }
  0x23   : > { %p615_p1 = pnand %p613_p13, %p599_p0  ;;  %p621_p3 = scmp.lt.s32.totalorder %s619_s20, %s612_s13 }
  0x25   : > { %p616_p11 = pneg %p615_p1  ;;  %p622_p4 = por %p621_p3, %p620_p10 }
  0x27   : > { %p623_p5 = pnand %p622_p4, %p616_p11 }
  0x29   : > { %626 = shalt.err (!%p623_p5)
}
  0x2a   : > { %s696_s21 = smov 256   ;;  %s697_s22 = smov 16  }
  0x2b   : > { %551 = dma.hbm_to_vmem [thread:$0]  (!%p780_p12), %s776_s25, 1024, %s784_s27, %s786_s29, %s696_s21, %s696_s21, %s697_s22  }
  0x2c   : > { %p531_p0 = scmp.ge.s32.totalorder %s693_s9, 1  ;;  %p107_p2 = scmp.lt.s32.totalorder %s693_s9, 5 }
  0x2e   : > { %p108_p7 = pnand %p531_p0, %p107_p2 }
  0x30   : > { %111 = sbr.rel (%p108_p7) target bundleno = 266 (0x10a), region = 24 }
  0x37   : > { %s817_s23 = sand.u32 1, %s685_s7  }
  0x38   : > { %s532_s24 = sshll.u32 %s817_s23, 6  ;;  %s114_s26 = scalar_lea.sflag [#allocation3], %s817_s23 }
  0x39   : > { %s117_s30 = scalar_lea.vmem [#allocation2], %s532_s24 }
  0x3a   : > { %672 = dma.done.wait (%p757_p6), %s114_s26, 1024  }
  0x3b   : > { %674 = vsyncadd (%p757_p6), %s114_s26, 4294966272  ;;  %v827_v0 = vld [vmem:[%s117_s30 + $0x20] sm:$0xff]  ;;  %s698_s25 = smov 127   ;;  %v833_v2 = vld [vmem:[%s117_s30 + $0x30] sm:$0xff]  ;;  %s699_s17 = smov 1   ;;  %v146_v18 = vlaneseq }
  0x3c   : > { %v829_v1 = vld [vmem:[%s117_s30] sm:$0xff]  ;;  %170 = vrot.lane.b32.xlu1 %v827_v0, %s698_s25  ;;  %v835_v3 = vld [vmem:[%s117_s30 + $0x10] sm:$0xff]  ;;  %v839_v4 = vld [vmem:[%s117_s30 + $0x18] sm:$0xff]  ;;  %s700_s27 = smov 112   ;;  %s701_s28 = smov 16   ;;  %v340_v42 = vrot.slane %v827_v0, 1 }
  0x3d   : > { %166 = vrot.lane.b32.xlu0 %v829_v1, %s698_s25  ;;  %v841_v5 = vld [vmem:[%s117_s30 + $0x8] sm:$0xff]  ;;  %v845_v6 = vld [vmem:[%s117_s30 + $0x38] sm:$0xff]  ;;  %v907_v21 = vand.u32 127, %v146_v18  ;;  %v913_v24 = vshrl.u32 %v146_v18, 7  ;;  %v343_v29 = vrot.slane %v839_v4, 1  ;;  %v338_v33 = vrot.slane %v829_v1, 1 }
  0x3e   : > { %v847_v7 = vld [vmem:[%s117_s30 + $0x28] sm:$0xff]  ;;  %v339_v30 = vrot.slane %v841_v5, 1  ;;  %v342_v34 = vrot.slane %v835_v3, 1  ;;  %v380_v37 = vrot.slane %v839_v4, 7  ;;  %v375_v39 = vrot.slane %v829_v1, 7  ;;  %s135_s29 = scalar_lea.vmem [#allocation5], %s532_s24 }
  0x3f   : > { %1296 = vst [vmem:[#allocation8_spill] sm:$0xff] %v847_v7  ;;  %v916_v25 = vadd.s32 128, %v907_v21  ;;  %v148_v28 = vadd.s32 8, %v913_v24  ;;  %vm346_vm0 = vcmp.lt.s32.totalorder %v913_v24, 7  ;;  %v152_v31 = vand.u32 15, %v907_v21  ;;  %s543_s2 = sshll.u32 %s735_s10, 10 }
  0x40   : > { %172 = vrot.lane.b32.xlu1 %v833_v2, %s698_s25  ;;  %vm383_vm2 = vcmp.lt.s32.totalorder %v913_v24, 1  ;;  %v352_v38 = vsel %vm346_vm0, %v343_v29, %v339_v30  ;;  %v376_v40 = vrot.slane %v841_v5, 7  ;;  %v379_v41 = vrot.slane %v835_v3, 7  ;;  %s451_s3 = sshll.u32 %s135_s29, 4  ;;  %s1239_s11 = scalar_lea.hbm %s1287_s1, %s543_s2  ;;  %s1242_s3 = int_to_ptr.vmem [resolvable:$true] %s451_s3 }
  0x41   : > { %168 = vrot.lane.b32.xlu0 %v835_v3, %s698_s25  ;;  %v153_v32 = vand.u32 15, %v916_v25  ;;  %vm155_vm1 = vcmp.lt.s32.totalorder %v148_v28, 15  ;;  %v341_v43 = vrot.slane %v847_v7, 1  ;;  %v344_v44 = vrot.slane %v833_v2, 1  ;;  %s437_s10 = scalar_lea.sflag [#allocation4], %s817_s23  ;;  %s627_s13 = scalar_lea.vmem %s1242_s3, 1024 }
  0x42   : > { %v345_v45 = vrot.slane %v845_v6, 1  ;;  %vm945_vm3 = vcmp.lt.s32.totalorder %v152_v31, 15  ;;  %vm182_vm5 = vcmp.lt.s32.totalorder %v907_v21, 127  ;;  %v351_v48 = vsel %vm346_vm0, %v342_v34, %v338_v33  ;;  %p628_p6 = scmp.ne.s32.totalorder %s1242_s3, %s627_s13  ;;  %p1306_p10 = scmp.ne.s32.totalorder %s1293_s18, 0 }
  0x43   : > { %vm949_vm4 = vcmp.lt.s32.totalorder %v153_v32, 15  ;;  %vm956_vm6 = vcmp.ge.s32.totalorder %v152_v31, 1  ;;  %vm960_vm7 = vcmp.ge.s32.totalorder %v153_v32, 1  ;;  %vm219_vm8 = vcmp.lt.s32.totalorder %v907_v21, 1  ;;  %s702_s14 = smov [#allocation5]  }
  0x44   : > { %176 = vrot.lane.b32.xlu1 %v839_v4, %s698_s25  ;;  %v970_v53 = vsel %vm155_vm1, %v352_v38, 1.0  ;;  %vm156_vm9 = vcmp.ge.s32.totalorder %v913_v24, 1  ;;  %v389_v54 = vsel %vm383_vm2, %v380_v37, %v376_v40  ;;  %v388_v55 = vsel %vm383_vm2, %v379_v41, %v375_v39  ;;  %p629_p11 = pnand %p628_p6, %p1306_p10  ;;  %s631_s16 = sshll.u32 %s702_s14, 4  ;;  %s632_s16 = int_to_ptr.vmem [resolvable:$false] %s631_s16 }
  0x45   : > { %174 = vrot.lane.b32.xlu0 %v841_v5, %s698_s25  ;;  %v377_v56 = vrot.slane %v827_v0, 7  ;;  %v381_v57 = vrot.slane %v833_v2, 7  ;;  %vm264_vm10 = vcmp.lt.s32.totalorder %v907_v21, 112  ;;  %v981_v58 = vsel %vm155_vm1, %v351_v48, 1.0  ;;  %s633_s20 = scalar_lea.vmem %s632_s16, 2048  ;;  %p634_p8 = scmp.lt.s32.totalorder %s1242_s3, %s632_s16 }
  0x46   : > { %v985_v59 = vsel %vm346_vm0, %v339_v30, %v343_v29  ;;  %v353_v60 = vsel %vm346_vm0, %v344_v44, %v340_v42  ;;  %v354_v61 = vsel %vm346_vm0, %v345_v45, %v341_v43  ;;  %v993_v62 = vsel %vm383_vm2, %v375_v39, %v379_v41  ;;  %p630_p12 = pneg %p629_p11  ;;  %p635_p9 = scmp.lt.s32.totalorder %s633_s20, %s627_s13 }
  0x47   : > { %v997_v63 = vsel %vm383_vm2, %v376_v40, %v380_v37  ;;  %v378_v18 = vrot.slane %v847_v7, 7  ;;  %v382_v31 = vrot.slane %v845_v6, 7  ;;  %v1003_v32 = vsel %vm156_vm9, %v389_v54, 1.0 }
  0x48   : > { %180 = vrot.lane.b32.xlu1 %v845_v6, %s698_s25  ;;  %v1007_v38 = vsel %vm346_vm0, %v338_v33, %v342_v34  ;;  %v1011_v39 = vsel %vm156_vm9, %v388_v55, 1.0  ;;  %v1015_v37 = vsel %vm346_vm0, %v340_v42, %v344_v44  ;;  %vm159_vm11 = vcmp.lt.s32.totalorder %v916_v25, 240  ;;  %p636_p13 = por %p635_p9, %p634_p8 }
  0x49   : > { %178 = vrot.lane.b32.xlu0 %v847_v7, %s698_s25  ;;  %v1019_v40 = vsel %vm155_vm1, %v353_v60, 1.0  ;;  %v1022_v41 = vsel %vm155_vm1, %v354_v61, 1.0  ;;  %v1026_v33 = vsel %vm346_vm0, %v341_v43, %v345_v45  ;;  %v390_v34 = vsel %vm383_vm2, %v381_v57, %v377_v56 }
  0x4a   : > { %v1060_v48 = vsel %vm383_vm2, %v378_v18, %v382_v31  ;;  %v1076_v55 = vsel %vm156_vm9, %v390_v34, 1.0  ;;  %vm309_vm12 = vcmp.lt.s32.totalorder %v907_v21, 16  ;;  %vm160_vm13 = vcmp.ge.s32.totalorder %v907_v21, 16  ;;  %p637_p1 = pnand %p636_p13, %p630_p12 }
  0x4c   : > { %205 = vrot.lane.b32.xlu1 %v835_v3, %s699_s17 }
  0x4d   : > { %203 = vrot.lane.b32.xlu0 %v829_v1, %s699_s17 }
  0x50   : > { %209 = vrot.lane.b32.xlu1 %v833_v2, %s699_s17 }
  0x51   : > { %207 = vrot.lane.b32.xlu0 %v827_v0, %s699_s17 }
  0x54   : > { %213 = vrot.lane.b32.xlu1 %v839_v4, %s699_s17 }
  0x55   : > { %211 = vrot.lane.b32.xlu0 %v841_v5, %s699_s17 }
  0x58   : > { %217 = vrot.lane.b32.xlu1 %v845_v6, %s699_s17 }
  0x59   : > { %215 = vrot.lane.b32.xlu0 %v847_v7, %s699_s17 }
  0x5c   : > { %250 = vrot.lane.b32.xlu1 %v835_v3, %s700_s27 }
  0x5d   : > { %248 = vrot.lane.b32.xlu0 %v829_v1, %s700_s27 }
  0x60   : > { %254 = vrot.lane.b32.xlu1 %v833_v2, %s700_s27 }
  0x61   : > { %252 = vrot.lane.b32.xlu0 %v827_v0, %s700_s27 }
  0x64   : > { %258 = vrot.lane.b32.xlu1 %v839_v4, %s700_s27 }
  0x65   : > { %256 = vrot.lane.b32.xlu0 %v841_v5, %s700_s27 }
  0x68   : > { %262 = vrot.lane.b32.xlu1 %v845_v6, %s700_s27 }
  0x69   : > { %260 = vrot.lane.b32.xlu0 %v847_v7, %s700_s27 }
  0x6c   : > { %295 = vrot.lane.b32.xlu1 %v835_v3, %s701_s28 }
  0x6d   : > { %293 = vrot.lane.b32.xlu0 %v829_v1, %s701_s28 }
  0x70   : > { %299 = vrot.lane.b32.xlu1 %v833_v2, %s701_s28 }
  0x71   : > { %297 = vrot.lane.b32.xlu0 %v827_v0, %s701_s28 }
  0x74   : > { %303 = vrot.lane.b32.xlu1 %v839_v4, %s701_s28 }
  0x75   : > { %301 = vrot.lane.b32.xlu0 %v841_v5, %s701_s28 }
  0x78   : > { %307 = vrot.lane.b32.xlu1 %v845_v6, %s701_s28 }
  0x79   : > { %305 = vrot.lane.b32.xlu0 %v847_v7, %s701_s28 }
  0xae   : > { %v883_v8 = vpop.permute.xlu1 %170 }
  0xaf   : > { %v885_v9 = vpop.permute.xlu0 %166 }
  0xb2   : > { %v887_v10 = vpop.permute.xlu1 %172 }
  0xb3   : > { %v889_v11 = vpop.permute.xlu0 %168 }
  0xb6   : > { %v891_v12 = vpop.permute.xlu1 %176 }
  0xb7   : > { %v893_v13 = vpop.permute.xlu0 %174  ;;  %v184_v42 = vsel %vm182_vm5, %v889_v11, %v891_v12  ;;  %v188_v44 = vsel %vm182_vm5, %v891_v12, %v889_v11  ;;  %v1056_v12 = vsel %vm383_vm2, %v377_v56, %v381_v57 }
  0xb8   : > { %v183_v28 = vsel %vm182_vm5, %v885_v9, %v893_v13  ;;  %v187_v43 = vsel %vm182_vm5, %v893_v13, %v885_v9  ;;  %v197_v56 = vsel %vm945_vm3, %v184_v42, 1.0  ;;  %v198_v57 = vsel %vm949_vm4, %v188_v44, 1.0 }
  0xb9   : > { %v195_v60 = vsel %vm945_vm3, %v183_v28, 1.0 }
  0xba   : > { %v895_v14 = vpop.permute.xlu1 %180 }
  0xbb   : > { %v897_v15 = vpop.permute.xlu0 %178  ;;  %v186_v45 = vsel %vm182_vm5, %v887_v10, %v895_v14  ;;  %v190_v11 = vsel %vm182_vm5, %v895_v14, %v887_v10  ;;  %v1072_v14 = vsel %vm383_vm2, %v382_v31, %v378_v18 }
  0xbc   : > { %v202_v61 = vsel %vm949_vm4, %v190_v11, 1.0  ;;  %v185_v18 = vsel %vm182_vm5, %v883_v8, %v897_v15  ;;  %v189_v31 = vsel %vm182_vm5, %v897_v15, %v883_v8 }
  0xbd   : > { %v199_v11 = vsel %vm945_vm3, %v185_v18, 1.0 }
  0xbe   : > { %v899_v16 = vpop.permute.xlu1 %205 }
  0xbf   : > { %v901_v17 = vpop.permute.xlu0 %203 }
  0xc2   : > { %v903_v19 = vpop.permute.xlu1 %209 }
  0xc3   : > { %v905_v20 = vpop.permute.xlu0 %207 }
  0xc6   : > { %v909_v22 = vpop.permute.xlu1 %213 }
  0xc7   : > { %v911_v23 = vpop.permute.xlu0 %211  ;;  %v221_v9 = vsel %vm219_vm8, %v899_v16, %v909_v22  ;;  %v225_v13 = vsel %vm219_vm8, %v909_v22, %v899_v16  ;;  %v196_v16 = vsel %vm949_vm4, %v187_v43, 1.0  ;;  %v201_v22 = vsel %vm945_vm3, %v186_v45, 1.0 }
  0xc8   : > { %v234_v34 = vsel %vm956_vm6, %v225_v13, 1.0  ;;  %v235_v42 = vsel %vm960_vm7, %v221_v9, 1.0  ;;  %v220_v44 = vsel %vm219_vm8, %v901_v17, %v911_v23  ;;  %v224_v28 = vsel %vm219_vm8, %v911_v23, %v901_v17 }
  0xc9   : > { %v200_v9 = vsel %vm949_vm4, %v189_v31, 1.0  ;;  %v242_v13 = vmul.f32 %v234_v34, %v197_v56  ;;  %v243_v7 = vmul.f32 %v235_v42, %v198_v57 }
  0xca   : > { %v918_v26 = vpop.permute.xlu1 %217 }
  0xcb   : > { %v920_v27 = vpop.permute.xlu0 %215  ;;  %v223_v8 = vsel %vm219_vm8, %v903_v19, %v918_v26  ;;  %v227_v15 = vsel %vm219_vm8, %v918_v26, %v903_v19 }
  0xcc   : > { %v222_v43 = vsel %vm219_vm8, %v905_v20, %v920_v27  ;;  %v226_v17 = vsel %vm219_vm8, %v920_v27, %v905_v20  ;;  %v232_v20 = vsel %vm956_vm6, %v224_v28, 1.0  ;;  %v233_v27 = vsel %vm960_vm7, %v220_v44, 1.0 }
  0xcd   : > { %v238_v46 = vsel %vm956_vm6, %v227_v15, 1.0  ;;  %v239_v47 = vsel %vm960_vm7, %v223_v8, 1.0  ;;  %v236_v18 = vsel %vm956_vm6, %v226_v17, 1.0  ;;  %v237_v31 = vsel %vm960_vm7, %v222_v43, 1.0 }
  0xce   : > { %v930_v35 = vpop.permute.xlu1 %250  ;;  %v240_v28 = vmul.f32 %v232_v20, %v195_v60  ;;  %v241_v8 = vmul.f32 %v233_v27, %v196_v16  ;;  %v247_v15 = vmul.f32 %v239_v47, %v202_v61  ;;  %v244_v43 = vmul.f32 %v236_v18, %v199_v11 }
  0xcf   : > { %v932_v36 = vpop.permute.xlu0 %248  ;;  %v245_v17 = vmul.f32 %v237_v31, %v200_v9 }
  0xd2   : > { %v965_v51 = vpop.permute.xlu1 %254 }
  0xd3   : > { %v967_v52 = vpop.permute.xlu0 %252 }
  0xd6   : > { %v259_v29 = vpop.permute.xlu1 %258 }
  0xd7   : > { %v257_v30 = vpop.permute.xlu0 %256  ;;  %v270_v19 = vsel %vm264_vm10, %v259_v29, %v930_v35  ;;  %v266_v56 = vsel %vm264_vm10, %v930_v35, %v259_v29  ;;  %v246_v29 = vmul.f32 %v238_v46, %v201_v22 }
  0xd8   : > { %v269_v26 = vsel %vm264_vm10, %v257_v30, %v932_v36  ;;  %v280_v57 = vsel %vm159_vm11, %v270_v19, 1.0  ;;  %v265_v34 = vsel %vm264_vm10, %v932_v36, %v257_v30  ;;  %v287_v36 = vmul.f32 %v266_v56, %v242_v13 }
  0xd9   : > { %v278_v42 = vsel %vm159_vm11, %v269_v26, 1.0  ;;  %v288_v30 = vmul.f32 %v280_v57, %v243_v7  ;;  %v285_v19 = vmul.f32 %v265_v34, %v240_v28 }
  0xda   : > { %v263_v54 = vpop.permute.xlu1 %262  ;;  %v286_v26 = vmul.f32 %v278_v42, %v241_v8 }
  0xdb   : > { %v261_v10 = vpop.permute.xlu0 %260  ;;  %v272_v50 = vsel %vm264_vm10, %v263_v54, %v965_v51  ;;  %v268_v60 = vsel %vm264_vm10, %v965_v51, %v263_v54 }
  0xdc   : > { %v271_v35 = vsel %vm264_vm10, %v261_v10, %v967_v52  ;;  %v284_v16 = vsel %vm159_vm11, %v272_v50, 1.0  ;;  %v267_v20 = vsel %vm264_vm10, %v967_v52, %v261_v10  ;;  %v291_v27 = vmul.f32 %v268_v60, %v246_v29 }
  0xdd   : > { %v282_v22 = vsel %vm159_vm11, %v271_v35, 1.0  ;;  %v289_v46 = vmul.f32 %v267_v20, %v244_v43  ;;  %v292_v31 = vmul.f32 %v284_v16, %v247_v15 }
  0xde   : > { %v296_v23 = vpop.permute.xlu1 %295 }
  0xdf   : > { %v294_v45 = vpop.permute.xlu0 %293 }
  0xe2   : > { %v300_v44 = vpop.permute.xlu1 %299 }
  0xe3   : > { %v298_v49 = vpop.permute.xlu0 %297 }
  0xe6   : > { %v304_v61 = vpop.permute.xlu1 %303 }
  0xe7   : > { %v302_v11 = vpop.permute.xlu0 %301  ;;  %v311_v7 = vsel %vm309_vm12, %v296_v23, %v304_v61  ;;  %v315_v9 = vsel %vm309_vm12, %v304_v61, %v296_v23  ;;  %v290_v23 = vmul.f32 %v282_v22, %v245_v17 }
  0xe8   : > { %v310_v51 = vsel %vm309_vm12, %v294_v45, %v302_v11  ;;  %v314_v54 = vsel %vm309_vm12, %v302_v11, %v294_v45  ;;  %v324_v52 = vsel %vm160_vm13, %v315_v9, 1.0  ;;  %v333_v10 = vmul.f32 %v311_v7, %v288_v30 }
  0xe9   : > { %v322_v25 = vsel %vm160_vm13, %v314_v54, 1.0  ;;  %v331_v13 = vmul.f32 %v310_v51, %v286_v26  ;;  %v332_v47 = vmul.f32 %v324_v52, %v287_v36 }
  0xea   : > { %v330_v18 = vmul.f32 %v322_v25, %v285_v19  ;;  %v370_v56 = vmul.f32 %v970_v53, %v333_v10  ;;  %v308_v34 = vpop.permute.xlu1 %307 }
  0xeb   : > { %v368_v57 = vmul.f32 %v985_v59, %v331_v13  ;;  %v306_v45 = vpop.permute.xlu0 %305  ;;  %v369_v42 = vmul.f32 %v981_v58, %v332_v47  ;;  %v313_v8 = vsel %vm309_vm12, %v300_v44, %v308_v34  ;;  %v317_v50 = vsel %vm309_vm12, %v308_v34, %v300_v44 }
  0xec   : > { %v367_v28 = vmul.f32 %v1007_v38, %v330_v18  ;;  %v407_v35 = vmul.f32 %v997_v63, %v370_v56  ;;  %v328_v53 = vsel %vm160_vm13, %v317_v50, 1.0  ;;  %v337_v59 = vmul.f32 %v313_v8, %v292_v31 }
  0xed   : > { %v405_v29 = vmul.f32 %v1003_v32, %v368_v57  ;;  %v406_v15 = vmul.f32 %v993_v62, %v369_v42  ;;  %v336_v43 = vmul.f32 %v328_v53, %v291_v27  ;;  %v312_v38 = vsel %vm309_vm12, %v298_v49, %v306_v45 }
  0xee   : > { %v404_v58 = vmul.f32 %v1011_v39, %v367_v28  ;;  %v415_v17 = vmul.f32 %v407_v35, %v839_v4  ;;  %v374_v63 = vmul.f32 %v1022_v41, %v337_v59  ;;  %v316_v32 = vsel %vm309_vm12, %v306_v45, %v298_v49 }
  0xef   : > { %v413_v44 = vmul.f32 %v405_v29, %v841_v5  ;;  %v414_v36 = vmul.f32 %v406_v15, %v835_v3  ;;  %v373_v39 = vmul.f32 %v1019_v40, %v336_v43  ;;  %v326_v30 = vsel %vm160_vm13, %v316_v32, 1.0 }
  0xf0   : > { %v412_v62 = vmul.f32 %v404_v58, %v829_v1  ;;  %v423_v19 = vmul.f32 %v415_v17, %v839_v4  ;;  %v411_v60 = vmul.f32 %v1060_v48, %v374_v63  ;;  %v334_v16 = vmul.f32 %v326_v30, %v289_v46 }
  0xf1   : > { %v421_v26 = vmul.f32 %v413_v44, %v841_v5  ;;  %v422_v41 = vmul.f32 %v414_v36, %v835_v3  ;;  %v410_v20 = vmul.f32 %v1056_v12, %v373_v39  ;;  %v335_v22 = vmul.f32 %v312_v38, %v290_v23 }
  0xf2   : > { %v420_v49 = vmul.f32 %v412_v62, %v829_v1  ;;  %431 = vst [vmem:[%s135_s29 + $0x18] sm:$0xff] %v423_v19  ;;  %v419_v21 = vmul.f32 %v411_v60, %v845_v6  ;;  %v401_v4 = vsel %vm156_vm9, %v1072_v14, 1.0  ;;  %v371_v5 = vmul.f32 %v1015_v37, %v334_v16  ;;  %v1305_v37 = vld [vmem:[#allocation8_spill] sm:$0xff] }
  0xf3   : > { %429 = vst [vmem:[%s135_s29 + $0x8] sm:$0xff] %v421_v26  ;;  %430 = vst [vmem:[%s135_s29 + $0x10] sm:$0xff] %v422_v41  ;;  %v418_v1 = vmul.f32 %v410_v20, %v833_v2  ;;  %v372_v3 = vmul.f32 %v1026_v33, %v335_v22 }
  0xf4   : > { %428 = vst [vmem:[%s135_s29] sm:$0xff] %v420_v49  ;;  %v427_v40 = vmul.f32 %v419_v21, %v845_v6  ;;  %v408_v12 = vmul.f32 %v1076_v55, %v371_v5 }
  0xf5   : > { %v426_v48 = vmul.f32 %v418_v1, %v833_v2  ;;  %v409_v61 = vmul.f32 %v401_v4, %v372_v3 }
  0xf6   : > { %435 = vst [vmem:[%s135_s29 + $0x38] sm:$0xff] %v427_v40  ;;  %v416_v24 = vmul.f32 %v408_v12, %v827_v0 }
  0xf7   : > { %434 = vst [vmem:[%s135_s29 + $0x30] sm:$0xff] %v426_v48  ;;  %v417_v14 = vmul.f32 %v409_v61, %v1305_v37 }
  0xf8   : > { %v424_v11 = vmul.f32 %v416_v24, %v827_v0 }
  0xf9   : > { %v425_v6 = vmul.f32 %v417_v14, %v1305_v37 }
  0xfa   : > { %432 = vst [vmem:[%s135_s29 + $0x20] sm:$0xff] %v424_v11 }
  0xfb   : > { %433 = vst [vmem:[%s135_s29 + $0x28] sm:$0xff] %v425_v6 }
  0xfc   : > { %640 = shalt.err (!%p637_p1)
}
  0xfd   : > { %s641_s21 = scalar_lea.hbm %s1239_s11, 1024  ;;  %s645_s26 = scalar_lea.hbm %s1287_s1, 4096 }
  0xfe   : > { %p642_p3 = scmp.ne.s32.totalorder %s1239_s11, %s641_s21  ;;  %p646_p0 = scmp.lt.u32.totalorder %s1239_s11, %s1287_s1 }
  0xff   : > { %p647_p2 = scmp.lt.u32.totalorder %s645_s26, %s641_s21  ;;  %p649_p6 = scmp.lt.u32.totalorder %s641_s21, %s1239_s11 }
 0x100   : > { %p643_p4 = pnand %p642_p3, %p1306_p10 }
 0x101   : > { %p648_p7 = por %p647_p2, %p646_p0 }
 0x102   : > { %p644_p5 = pneg %p643_p4 }
 0x103   : > { %p650_p11 = por %p649_p6, %p648_p7 }
 0x105   : > { %p651_p12 = pnand %p650_p11, %p644_p5 }
 0x107   : > { %654 = shalt.err (!%p651_p12)
}
 0x108   : > { %s703_s17 = smov 256  }
 0x109   : > { %546 = dma.vmem_to_hbm [thread:$0]  (%p1306_p10), %s1242_s3, 1024, %s1239_s11, %s437_s10, %s703_s17, %s703_s17, %s701_s28  }
 0x10a PF: > { %p557_p8 = scmp.ge.s32.totalorder %s693_s9, 2  ;;  %s466_s27 = sand.u32 1, %s681_s6  }
 0x10b   : > { %p1307_p9 = scmp.ne.s32.totalorder %s1294_s19, 0  ;;  %s467_s29 = scalar_lea.sflag [#allocation4], %s466_s27 }
 0x10d   : > { %p553_p13 = pnand %p557_p8, %p1307_p9 }
 0x10f   : > { %676 = dma.done.wait (!%p553_p13), %s467_s29, 1024  }
 0x110   : > { %678 = vsyncadd (!%p553_p13), %s467_s29, 4294966272  ;;  %p14_p1 = scmp.ge.s32.totalorder %s739_s12, 6   ;;  %s1308_s6 = smov %s685_s7 }
 0x111   : > { %s1309_s7 = smov %s689_s8  ;;  %s1310_s8 = smov %s751_s15 }
 0x112   : > { %s1311_s9 = smov %s739_s12  ;;  %16 = sbr.rel (!%p14_p1) target bundleno = 5 (0x5), region = 69 }
 0x119   :  { %472 = vsyncpa [#allocation3], 1 }
 0x11a   :  { %474 = vsyncpa [#allocation3 + $0x1], 1 }
 0x11b   :  { %475 = vsyncpa [#allocation4], 1 }
 0x11c   :  { %477 = vsyncpa [#allocation4 + $0x1], 1 }

</bundles_post_ra>
